<compile_context>
chip_gen: v5e
topology: v5e:2x2
jax: 0.10.0
libtpu: 0.0.40
codegen_flags: <defaults>
</compile_context>

<pallas_src>
import jax
import jax.numpy as jnp
from jax.experimental import pallas as pl
from jax.experimental.pallas import tpu as pltpu  # noqa: F401  (TPU backend registration)

EPS = 1e-5
_LANE = 128
_SUBLANE = 8


def _make_resblock_kernel(n_real: int, n_pad: int, mxu_dtype):
    """Build the fused kernel.

    n_real: true batch size (divisor for the batch statistics).
    n_pad:  padded batch size actually present in the block (multiple of 8).
    mxu_dtype: dtype fed to the two matmuls (bf16 or f32); accumulation is f32.
    """
    inv_n = 1.0 / float(n_real)
    need_row_mask = n_pad != n_real

    def kernel(x_ref, w1_ref, w2_ref, p_ref, o_ref):
        x = x_ref[...]                            # [n_pad, c_pad] f32 (residual kept in f32)
        p = p_ref[...]                            # [4, c_pad] = [g1; beta1; g2; beta2]
        g1, beta1, g2, beta2 = p[0:1], p[1:2], p[2:3], p[3:4]

        # ---- Linear 1 (MXU).  Bias omitted: it cancels under training-mode BN. ----
        h = jnp.dot(x.astype(mxu_dtype), w1_ref[...],
                    preferred_element_type=jnp.float32)

        # ---- BatchNorm1d #1: single-pass batch stats folded into one FMA. ----
        # Zero-padded batch rows of x give zero rows of h -> contribute 0 to the sums,
        # so dividing by the true batch size is exact.
        mean1 = jnp.sum(h, axis=0, keepdims=True) * inv_n
        ex2_1 = jnp.sum(h * h, axis=0, keepdims=True) * inv_n
        var1 = jnp.maximum(ex2_1 - mean1 * mean1, 0.0)
        scale1 = g1 * jax.lax.rsqrt(var1 + EPS)
        shift1 = beta1 - scale1 * mean1
        h = jax.nn.sigmoid(h * scale1 + shift1)

        if need_row_mask:
            # Padded batch rows are nonzero after BN1+sigmoid; zero them so they
            # neither feed Linear 2 nor pollute BN #2's statistics.
            rows = jax.lax.broadcasted_iota(jnp.int32, h.shape, 0)
            h = jnp.where(rows < n_real, h, 0.0)

        # ---- Linear 2 (MXU, bias again omitted). ----
        h = jnp.dot(h.astype(mxu_dtype), w2_ref[...],
                    preferred_element_type=jnp.float32)

        # ---- BatchNorm1d #2 ----
        mean2 = jnp.sum(h, axis=0, keepdims=True) * inv_n
        ex2_2 = jnp.sum(h * h, axis=0, keepdims=True) * inv_n
        var2 = jnp.maximum(ex2_2 - mean2 * mean2, 0.0)
        scale2 = g2 * jax.lax.rsqrt(var2 + EPS)
        shift2 = beta2 - scale2 * mean2

        # ---- Residual add + final Sigmoid (f32 elementwise path). ----
        o_ref[...] = jax.nn.sigmoid(h * scale2 + shift2 + x)

    return kernel


def resblock_forward(x, w1, b1, g1, beta1, w2, b2, g2, beta2, *, use_bf16_mxu=True):
    """ResBlock forward.

    x: [N, C];  w1, w2: [C_in, C_out] (stored transposed vs. torch, kernel does x @ W);
    b1, b2: accepted for API parity with nn.Linear but never loaded (they cancel under
    training-mode BatchNorm);  g*, beta*: [1, C] BN affine parameters.
    """
    del b1, b2  # mathematically irrelevant under training-mode BN -> not DMA'd

    n, c = x.shape
    c_pad = max(_LANE, pl.cdiv(c, _LANE) * _LANE)     # lane-dense feature dim
    n_pad = pl.cdiv(n, _SUBLANE) * _SUBLANE           # sublane-aligned batch dim
    mxu_dtype = jnp.bfloat16 if use_bf16_mxu else jnp.float32

    # Zero-pad to the aligned shapes; weights carried at MXU dtype to halve their DMA.
    x_p = jnp.pad(x.astype(jnp.float32), ((0, n_pad - n), (0, c_pad - c)))
    w1_p = jnp.pad(w1, ((0, c_pad - c), (0, c_pad - c))).astype(mxu_dtype)
    w2_p = jnp.pad(w2, ((0, c_pad - c), (0, c_pad - c))).astype(mxu_dtype)
    params = jnp.stack([g1.reshape(-1), beta1.reshape(-1),
                        g2.reshape(-1), beta2.reshape(-1)]).astype(jnp.float32)
    params_p = jnp.pad(params, ((0, 0), (0, c_pad - c)))   # [4, c_pad], single operand

    full = lambda shape: pl.BlockSpec(shape, lambda: (0,) * len(shape))
    out = pl.pallas_call(
        _make_resblock_kernel(n, n_pad, mxu_dtype),
        out_shape=jax.ShapeDtypeStruct((n_pad, c_pad), jnp.float32),
        grid=(),
        in_specs=[
            full((n_pad, c_pad)),      # x
            full((c_pad, c_pad)),      # w1
            full((c_pad, c_pad)),      # w2
            full((4, c_pad)),          # stacked BN params
        ],
        out_specs=full((n_pad, c_pad)),
    )(x_p, w1_p, w2_p, params_p)
    return out[:n, :c]


def resblock_reference(x, w1, b1, g1, beta1, w2, b2, g2, beta2):
    """Pure-JAX f32 reference (keeps the Linear biases to verify they cancel)."""
    h = x @ w1 + b1
    h = g1 * (h - h.mean(0)) / jnp.sqrt(h.var(0) + EPS) + beta1
    h = jax.nn.sigmoid(h)
    h = h @ w2 + b2
    h = g2 * (h - h.mean(0)) / jnp.sqrt(h.var(0) + EPS) + beta2
    return jax.nn.sigmoid(h + x)


if __name__ == "__main__":
    def make_case(key, n, c):
        ks = jax.random.split(key, 9)
        x = jax.random.normal(ks[0], (n, c), jnp.float32)
        bound = 1.0 / float(c) ** 0.5
        w1 = jax.random.uniform(ks[1], (c, c), jnp.float32, -bound, bound)
        b1 = jax.random.uniform(ks[2], (1, c), jnp.float32, -bound, bound)
        w2 = jax.random.uniform(ks[3], (c, c), jnp.float32, -bound, bound)
        b2 = jax.random.uniform(ks[4], (1, c), jnp.float32, -bound, bound)
        g1 = 1.0 + 0.1 * jax.random.normal(ks[5], (1, c), jnp.float32)
        bt1 = 0.1 * jax.random.normal(ks[6], (1, c), jnp.float32)
        g2 = 1.0 + 0.1 * jax.random.normal(ks[7], (1, c), jnp.float32)
        bt2 = 0.1 * jax.random.normal(ks[8], (1, c), jnp.float32)
        return (x, w1, b1, g1, bt1, w2, b2, g2, bt2)

    k1, k2 = jax.random.split(jax.random.PRNGKey(0))

    # Case 1: batch=8, in_channels=out_channels=32 (residual requires in==out).
    args = make_case(k1, 8, 32)
    ref = resblock_reference(*args)

    out_f32 = jax.block_until_ready(resblock_forward(*args, use_bf16_mxu=False))
    assert out_f32.shape == ref.shape
    assert jnp.allclose(out_f32, ref, atol=1e-5, rtol=1e-5), "f32 path mismatch"

    out_bf16 = jax.block_until_ready(resblock_forward(*args, use_bf16_mxu=True))
    assert jnp.allclose(out_bf16, ref, atol=2e-2, rtol=2e-2), "bf16-MXU path mismatch"

    # Case 2: unaligned batch/channels exercise the zero-padding + row-mask path.
    args2 = make_case(k2, 6, 20)
    ref2 = resblock_reference(*args2)
    out2 = jax.block_until_ready(resblock_forward(*args2, use_bf16_mxu=False))
    assert jnp.allclose(out2, ref2, atol=1e-5, rtol=1e-5), "padded path mismatch"

    print("KERNEL_OK")
</pallas_src>

<mosaic_0001>
module attributes {stable_mosaic.version = 11 : i64} {
  func.func @kernel(%arg0: memref<8x128xf32, #tpu.memory_space<vmem>>, %arg1: memref<128x128xf32, #tpu.memory_space<vmem>>, %arg2: memref<128x128xf32, #tpu.memory_space<vmem>>, %arg3: memref<4x128xf32, #tpu.memory_space<vmem>>, %arg4: memref<8x128xf32, #tpu.memory_space<vmem>>) attributes {dimension_semantics = [], scalar_prefetch = 0 : i64, scratch_operands = 0 : i64, tpu.core_type = #tpu.core_type<tc>} {
    %c0 = arith.constant 0 : index
    %c0_0 = arith.constant 0 : index
    %0 = vector.load %arg0[%c0, %c0_0] : memref<8x128xf32, #tpu.memory_space<vmem>>, vector<8x128xf32>
    %c0_1 = arith.constant 0 : index
    %c0_2 = arith.constant 0 : index
    %1 = vector.load %arg3[%c0_1, %c0_2] : memref<4x128xf32, #tpu.memory_space<vmem>>, vector<4x128xf32>
    %2 = vector.extract_strided_slice %1 {offsets = [0, 0], sizes = [1, 128], strides = [1, 1]} : vector<4x128xf32> to vector<1x128xf32>
    %3 = vector.extract_strided_slice %1 {offsets = [1, 0], sizes = [1, 128], strides = [1, 1]} : vector<4x128xf32> to vector<1x128xf32>
    %4 = vector.extract_strided_slice %1 {offsets = [2, 0], sizes = [1, 128], strides = [1, 1]} : vector<4x128xf32> to vector<1x128xf32>
    %5 = vector.extract_strided_slice %1 {offsets = [3, 0], sizes = [1, 128], strides = [1, 1]} : vector<4x128xf32> to vector<1x128xf32>
    %c0_3 = arith.constant 0 : index
    %c0_4 = arith.constant 0 : index
    %6 = vector.load %arg1[%c0_3, %c0_4] : memref<128x128xf32, #tpu.memory_space<vmem>>, vector<128x128xf32>
    %cst = arith.constant dense<0.000000e+00> : vector<8x128xf32>
    %7 = tpu.matmul %0, %6, %cst {dimension_numbers = #tpu.dot_dimension_numbers<[1], [0], [0], [1], [0, 0, 1, 1], [], []>} : vector<8x128xf32>, vector<128x128xf32>, vector<8x128xf32> -> vector<8x128xf32>
    %cst_5 = arith.constant dense<0.000000e+00> : vector<128xf32>
    %8 = vector.multi_reduction <add>, %7, %cst_5 [0] : vector<8x128xf32> to vector<128xf32>
    %9 = vector.shape_cast %8 : vector<128xf32> to vector<1x128xf32>
    %cst_6 = arith.constant 1.250000e-01 : f32
    %10 = vector.broadcast %cst_6 : f32 to vector<1x128xf32>
    %11 = arith.mulf %9, %10 : vector<1x128xf32>
    %12 = arith.mulf %7, %7 : vector<8x128xf32>
    %cst_7 = arith.constant dense<0.000000e+00> : vector<128xf32>
    %13 = vector.multi_reduction <add>, %12, %cst_7 [0] : vector<8x128xf32> to vector<128xf32>
    %14 = vector.shape_cast %13 : vector<128xf32> to vector<1x128xf32>
    %cst_8 = arith.constant 1.250000e-01 : f32
    %15 = vector.broadcast %cst_8 : f32 to vector<1x128xf32>
    %16 = arith.mulf %14, %15 : vector<1x128xf32>
    %17 = arith.mulf %11, %11 : vector<1x128xf32>
    %18 = arith.subf %16, %17 : vector<1x128xf32>
    %cst_9 = arith.constant 0.000000e+00 : f32
    %19 = vector.broadcast %cst_9 : f32 to vector<1x128xf32>
    %20 = arith.maximumf %18, %19 : vector<1x128xf32>
    %cst_10 = arith.constant 9.99999974E-6 : f32
    %21 = vector.broadcast %cst_10 : f32 to vector<1x128xf32>
    %22 = arith.addf %20, %21 : vector<1x128xf32>
    %23 = math.rsqrt %22 : vector<1x128xf32>
    %24 = arith.mulf %2, %23 : vector<1x128xf32>
    %25 = arith.mulf %24, %11 : vector<1x128xf32>
    %26 = arith.subf %3, %25 : vector<1x128xf32>
    %27 = vector.broadcast %24 : vector<1x128xf32> to vector<8x128xf32>
    %28 = arith.mulf %7, %27 : vector<8x128xf32>
    %29 = vector.broadcast %26 : vector<1x128xf32> to vector<8x128xf32>
    %30 = arith.addf %28, %29 : vector<8x128xf32>
    %31 = arith.negf %30 : vector<8x128xf32>
    %32 = math.exp %31 : vector<8x128xf32>
    %cst_11 = arith.constant 1.000000e+00 : f32
    %33 = vector.broadcast %cst_11 : f32 to vector<8x128xf32>
    %34 = arith.addf %33, %32 : vector<8x128xf32>
    %35 = arith.divf %33, %34 : vector<8x128xf32>
    %c0_12 = arith.constant 0 : index
    %c0_13 = arith.constant 0 : index
    %36 = vector.load %arg2[%c0_12, %c0_13] : memref<128x128xf32, #tpu.memory_space<vmem>>, vector<128x128xf32>
    %cst_14 = arith.constant dense<0.000000e+00> : vector<8x128xf32>
    %37 = tpu.matmul %35, %36, %cst_14 {dimension_numbers = #tpu.dot_dimension_numbers<[1], [0], [0], [1], [0, 0, 1, 1], [], []>} : vector<8x128xf32>, vector<128x128xf32>, vector<8x128xf32> -> vector<8x128xf32>
    %cst_15 = arith.constant dense<0.000000e+00> : vector<128xf32>
    %38 = vector.multi_reduction <add>, %37, %cst_15 [0] : vector<8x128xf32> to vector<128xf32>
    %39 = vector.shape_cast %38 : vector<128xf32> to vector<1x128xf32>
    %cst_16 = arith.constant 1.250000e-01 : f32
    %40 = vector.broadcast %cst_16 : f32 to vector<1x128xf32>
    %41 = arith.mulf %39, %40 : vector<1x128xf32>
    %42 = arith.mulf %37, %37 : vector<8x128xf32>
    %cst_17 = arith.constant dense<0.000000e+00> : vector<128xf32>
    %43 = vector.multi_reduction <add>, %42, %cst_17 [0] : vector<8x128xf32> to vector<128xf32>
    %44 = vector.shape_cast %43 : vector<128xf32> to vector<1x128xf32>
    %cst_18 = arith.constant 1.250000e-01 : f32
    %45 = vector.broadcast %cst_18 : f32 to vector<1x128xf32>
    %46 = arith.mulf %44, %45 : vector<1x128xf32>
    %47 = arith.mulf %41, %41 : vector<1x128xf32>
    %48 = arith.subf %46, %47 : vector<1x128xf32>
    %cst_19 = arith.constant 0.000000e+00 : f32
    %49 = vector.broadcast %cst_19 : f32 to vector<1x128xf32>
    %50 = arith.maximumf %48, %49 : vector<1x128xf32>
    %cst_20 = arith.constant 9.99999974E-6 : f32
    %51 = vector.broadcast %cst_20 : f32 to vector<1x128xf32>
    %52 = arith.addf %50, %51 : vector<1x128xf32>
    %53 = math.rsqrt %52 : vector<1x128xf32>
    %54 = arith.mulf %4, %53 : vector<1x128xf32>
    %55 = arith.mulf %54, %41 : vector<1x128xf32>
    %56 = arith.subf %5, %55 : vector<1x128xf32>
    %57 = vector.broadcast %54 : vector<1x128xf32> to vector<8x128xf32>
    %58 = arith.mulf %37, %57 : vector<8x128xf32>
    %59 = vector.broadcast %56 : vector<1x128xf32> to vector<8x128xf32>
    %60 = arith.addf %58, %59 : vector<8x128xf32>
    %61 = arith.addf %60, %0 : vector<8x128xf32>
    %62 = arith.negf %61 : vector<8x128xf32>
    %63 = math.exp %62 : vector<8x128xf32>
    %cst_21 = arith.constant 1.000000e+00 : f32
    %64 = vector.broadcast %cst_21 : f32 to vector<8x128xf32>
    %65 = arith.addf %64, %63 : vector<8x128xf32>
    %66 = arith.divf %64, %65 : vector<8x128xf32>
    %c0_22 = arith.constant 0 : index
    %c0_23 = arith.constant 0 : index
    %67 = vector.load %arg4[%c0_22, %c0_23] : memref<8x128xf32, #tpu.memory_space<vmem>>, vector<8x128xf32>
    tpu.vector_store %arg4[%c0_22, %c0_23], %66 {strides = array<i32>} : memref<8x128xf32, #tpu.memory_space<vmem>>, vector<8x128xf32>,
    return
  }
}

</mosaic_0001>

<bundles_post_ra>
// kernel: tpu_custom_call.1
= control target key start
LH: loop header
LB: loop body
LE: loop exit
PB: predicated region body
PF: predicated region fallthrough
CT: control target
= control target key end

     0   :  { %9 = vsyncpa [#allocation3], 0  ;;  %s501_s0 = inlined_call_operand.hbm [shape: f32[8,128], index: 0, kind: input, shape index: {}]   ;;  %s502_s1 = inlined_call_operand.hbm [shape: f32[128,128], index: 1, kind: input, shape index: {}]   ;;  %s503_s2 = inlined_call_operand.hbm [shape: f32[128,128], index: 2, kind: input, shape index: {}]   ;;  %s504_s3 = inlined_call_operand.hbm [shape: f32[4,128], index: 3, kind: input, shape index: {}]   ;;  %s505_s4 = inlined_call_operand.hbm [shape: f32[8,128], index: 4, kind: output, shape index: {}]  }
   0x1   :  { %10 = vsyncpa [#allocation6], 0 }
   0x2   :  { %11 = vsyncpa [#allocation9], 0  ;;  %s28_s17 = sshll.u32 %s502_s1, 4  ;;  %s29_s17 = int_to_ptr.hbm [resolvable:$true] %s28_s17 }
   0x3   :  { %12 = vsyncpa [#allocation4], 0  ;;  %s437_s18 = smov [#allocation5]   ;;  %s18_s22 = sshll.u32 %s501_s0, 4  ;;  %s19_s22 = int_to_ptr.hbm [resolvable:$true] %s18_s22 }
   0x4   :  { %s30_s19 = sshll.u32 %s437_s18, 4  ;;  %s438_s23 = smov 128   ;;  %s31_s19 = int_to_ptr.vmem [resolvable:$true] %s30_s19 }
   0x5   :  { %s439_s24 = smov 8   ;;  %s440_s25 = smov [#allocation2]  }
   0x6   :  { %36 = dma.hbm_to_vmem [thread:$0]  %s29_s17, 2048, %s31_s19, [#allocation6], %s438_s23, %s438_s23, %s439_s24  }
   0x7   :  { %s20_s26 = sshll.u32 %s440_s25, 4  ;;  %s41_s29 = sshll.u32 %s503_s2, 4  ;;  %s21_s26 = int_to_ptr.vmem [resolvable:$true] %s20_s26  ;;  %s42_s29 = int_to_ptr.hbm [resolvable:$true] %s41_s29 }
   0x8   :  { %23 = dma.hbm_to_vmem [thread:$0]  %s19_s22, 128, %s21_s26, [#allocation3]  }
   0x9   :  { %s55_s5 = sshll.u32 %s504_s3, 4  ;;  %s441_s6 = smov [#allocation7]   ;;  %s56_s5 = int_to_ptr.hbm [resolvable:$true] %s55_s5 }
   0xa   :  { %s43_s7 = sshll.u32 %s441_s6, 4  ;;  %s442_s0 = smov [#allocation8]   ;;  %s44_s7 = int_to_ptr.vmem [resolvable:$true] %s43_s7 }
   0xb   :  { %49 = dma.hbm_to_vmem [thread:$0]  %s42_s29, 2048, %s44_s7, [#allocation6], %s438_s23, %s438_s23, %s439_s24  }
   0xc   :  { %s57_s8 = sshll.u32 %s442_s0, 4  ;;  %s58_s8 = int_to_ptr.vmem [resolvable:$true] %s57_s8 }
   0xd   :  { %60 = dma.hbm_to_vmem [thread:$0]  %s56_s5, 64, %s58_s8, [#allocation9]  }
   0xe   :  { %429 = dma.done.wait [#allocation3], 128  }
   0xf   :  { %430 = vsyncadd [#allocation3], 4294967168 }
  0x10   :  { %431 = dma.done.wait [#allocation6], 4096  }
  0x11   :  { %432 = vsyncadd [#allocation6], 4294963200 }
  0x12   :  { %433 = dma.done.wait [#allocation9], 64  }
  0x13   :  { %434 = vsyncadd [#allocation9], 4294967232  ;;  %v94_v0 = vld [vmem:[#allocation5 + $0x78] sm:$0xff]  ;;  %v93_v1 = vld [vmem:[#allocation5 + $0x70] sm:$0xff]  ;;  %s443_s2 = smov [#allocation10]   ;;  %s276_s11 = sshll.u32 %s505_s4, 4  ;;  %s277_s11 = int_to_ptr.hbm [resolvable:$true] %s276_s11 }
  0x14   :  { %95 = vmatpush.msra.mxu0 %v94_v0  ;;  %v92_v2 = vld [vmem:[#allocation5 + $0x68] sm:$0xff]  ;;  %v91_v3 = vld [vmem:[#allocation5 + $0x60] sm:$0xff]  ;;  %v90_v4 = vld [vmem:[#allocation5 + $0x58] sm:$0xff]  ;;  %s274_s3 = sshll.u32 %s443_s2, 4  ;;  %s275_s3 = int_to_ptr.vmem [resolvable:$true] %s274_s3 }
  0x15   :  { %v89_v5 = vld [vmem:[#allocation5 + $0x50] sm:$0xff]  ;;  %v88_v6 = vld [vmem:[#allocation5 + $0x48] sm:$0xff]  ;;  %v87_v7 = vld [vmem:[#allocation5 + $0x40] sm:$0xff] }
  0x16   :  { %96 = vmatpush.msra.mxu0 %v93_v1  ;;  %v86_v8 = vld [vmem:[#allocation5 + $0x38] sm:$0xff]  ;;  %v85_v9 = vld [vmem:[#allocation5 + $0x30] sm:$0xff]  ;;  %v84_v10 = vld [vmem:[#allocation5 + $0x28] sm:$0xff] }
  0x17   :  { %v83_v11 = vld [vmem:[#allocation5 + $0x20] sm:$0xff]  ;;  %v82_v12 = vld [vmem:[#allocation5 + $0x18] sm:$0xff]  ;;  %v81_v13 = vld [vmem:[#allocation5 + $0x10] sm:$0xff] }
  0x18   :  { %97 = vmatpush.msra.mxu0 %v92_v2  ;;  %v80_v14 = vld [vmem:[#allocation5 + $0x8] sm:$0xff]  ;;  %v79_v15 = vld [vmem:[#allocation5] sm:$0xff]  ;;  %v481_v16 = vld [vmem:[#allocation2] sm:$0xff] }
  0x19   :  { %v188_v35 = vld [vmem:[#allocation7 + $0x78] sm:$0xff]  ;;  %v187_v37 = vld [vmem:[#allocation7 + $0x70] sm:$0xff]  ;;  %v186_v39 = vld [vmem:[#allocation7 + $0x68] sm:$0xff] }
  0x1a   :  { %98 = vmatpush.msra.mxu0 %v91_v3  ;;  %189 = vmatpush.msra.mxu1 %v188_v35  ;;  %v185_v40 = vld [vmem:[#allocation7 + $0x60] sm:$0xff]  ;;  %v184_v41 = vld [vmem:[#allocation7 + $0x58] sm:$0xff]  ;;  %v183_v42 = vld [vmem:[#allocation7 + $0x50] sm:$0xff] }
  0x1b   :  { %v182_v44 = vld [vmem:[#allocation7 + $0x48] sm:$0xff]  ;;  %v181_v46 = vld [vmem:[#allocation7 + $0x40] sm:$0xff]  ;;  %v180_v48 = vld [vmem:[#allocation7 + $0x38] sm:$0xff] }
  0x1c   :  { %99 = vmatpush.msra.mxu0 %v90_v4  ;;  %190 = vmatpush.msra.mxu1 %v187_v37  ;;  %v179_v49 = vld [vmem:[#allocation7 + $0x30] sm:$0xff]  ;;  %v178_v51 = vld [vmem:[#allocation7 + $0x28] sm:$0xff]  ;;  %v177_v53 = vld [vmem:[#allocation7 + $0x20] sm:$0xff] }
  0x1d   :  { %v490_v54 = vld [vmem:[#allocation8] sm:$0xf]  ;;  %v176_v56 = vld [vmem:[#allocation7 + $0x18] sm:$0xff]  ;;  %v175_v59 = vld [vmem:[#allocation7 + $0x10] sm:$0xff] }
  0x1e   :  { %100 = vmatpush.msra.mxu0 %v89_v5  ;;  %191 = vmatpush.msra.mxu1 %v186_v39  ;;  %v174_v61 = vld [vmem:[#allocation7 + $0x8] sm:$0xff]  ;;  %v173_v0 = vld [vmem:[#allocation7] sm:$0xff] }
  0x20   :  { %101 = vmatpush.msra.mxu0 %v88_v6  ;;  %192 = vmatpush.msra.mxu1 %v185_v40 }
  0x22   :  { %102 = vmatpush.msra.mxu0 %v87_v7  ;;  %193 = vmatpush.msra.mxu1 %v184_v41 }
  0x24   :  { %103 = vmatpush.msra.mxu0 %v86_v8  ;;  %194 = vmatpush.msra.mxu1 %v183_v42 }
  0x26   :  { %104 = vmatpush.msra.mxu0 %v85_v9  ;;  %195 = vmatpush.msra.mxu1 %v182_v44 }
  0x28   :  { %105 = vmatpush.msra.mxu0 %v84_v10  ;;  %196 = vmatpush.msra.mxu1 %v181_v46 }
  0x2a   :  { %106 = vmatpush.msra.mxu0 %v83_v11  ;;  %197 = vmatpush.msra.mxu1 %v180_v48 }
  0x2c   :  { %107 = vmatpush.msra.mxu0 %v82_v12  ;;  %198 = vmatpush.msra.mxu1 %v179_v49 }
  0x2e   :  { %108 = vmatpush.msra.mxu0 %v81_v13  ;;  %199 = vmatpush.msra.mxu1 %v178_v51 }
  0x30   :  { %109 = vmatpush.msra.mxu0 %v80_v14  ;;  %200 = vmatpush.msra.mxu1 %v177_v53 }
  0x32   :  { %110 = vmatpush.msra.mxu0 %v79_v15  ;;  %201 = vmatpush.msra.mxu1 %v176_v56 }
  0x33   :  { %111 = vmatmul.f32.vlgmr.msra.gmra.mxu0 %v481_v16 }
  0x34   :  { %202 = vmatpush.msra.mxu1 %v175_v59 }
  0x36   :  { %203 = vmatpush.msra.mxu1 %v174_v61 }
  0x38   :  { %204 = vmatpush.msra.mxu1 %v173_v0 }
  0xb0   :  { %v484_v17 = vpop.f32.mrf.mxu0 }
  0xb1   :  { %v115_v18 = vrot.slane %v484_v17, 4  ;;  %v122_v19 = vmul.f32 %v484_v17, %v484_v17 }
  0xb3   :  { %v116_v20 = vadd.f32 %v115_v18, %v484_v17  ;;  %v123_v21 = vrot.slane %v122_v19, 4 }
  0xb5   :  { %v117_v22 = vrot.slane %v116_v20, 2  ;;  %v124_v23 = vadd.f32 %v123_v21, %v122_v19 }
  0xb7   :  { %v118_v24 = vadd.f32 %v117_v22, %v116_v20  ;;  %v125_v25 = vrot.slane %v124_v23, 2 }
  0xb9   :  { %v119_v26 = vrot.slane %v118_v24, 1  ;;  %v126_v27 = vadd.f32 %v125_v25, %v124_v23 }
  0xbb   :  { %v120_v28 = vadd.f32 %v119_v26, %v118_v24  ;;  %v127_v29 = vrot.slane %v126_v27, 1 }
  0xbd   :  { %v121_v30 = vmul.f32 0.125, %v120_v28  ;;  %v128_v31 = vadd.f32 %v127_v29, %v126_v27 }
  0xbf   :  { %v129_v32 = vmul.f32 0.125, %v128_v31  ;;  %v130_v33 = vmul.f32 %v121_v30, %v121_v30 }
  0xc1   :  { %v131_v34 = vsub.f32 %v129_v32, %v130_v33 }
  0xc3   :  { %v132_v36 = vmax.f32 %v131_v34, 0.0 }
  0xc5   :  { %v133_v38 = vadd.f32 1e-05, %v132_v36 }
  0xc7   :  { %297 = vrsqrt.f32 %v133_v38  ;;  %vm140_vm1 = vweird.f32 %v133_v38 }
  0xcd   :  { %v298_v43 = vpop.eup %297 }
  0xce   :  { %v135_v45 = vmul.f32 %v298_v43, %v133_v38  ;;  %vm141_vm0 = vweird.f32 %v298_v43 }
  0xcf   :  { %vm142_vm2 = vmor %vm140_vm1, %vm141_vm0 }
  0xd0   :  { %v136_v47 = vmul.f32 %v298_v43, %v135_v45 }
  0xd2   :  { %v137_v50 = vmul.f32 0.5, %v136_v47 }
  0xd4   :  { %v138_v52 = vsub.f32 1.5, %v137_v50 }
  0xd6   :  { %v139_v55 = vmul.f32 %v298_v43, %v138_v52 }
  0xd8   :  { %v143_v57 = vsel %vm142_vm2, %v298_v43, %v139_v55 }
  0xd9   :  { %v144_v58 = vmul.f32 %v143_v57, %v490_v54 }
  0xdb   :  { %v145_v60 = vmul.f32 %v144_v58, %v121_v30  ;;  %v150_v63 = vperm.slane %v144_v58, 0 }
  0xdd   :  { %v147_v62 = vrot.slane %v145_v60, 7  ;;  %v151_v2 = vmul.f32 %v150_v63, %v484_v17 }
  0xdf   :  { %v149_v1 = vsub.f32 %v490_v54, %v147_v62 }
  0xe1   :  { %v152_v3 = vperm.slane %v149_v1, 1 }
  0xe3   :  { %v153_v4 = vadd.f32 %v152_v3, %v151_v2 }
  0xe5   :  { %v288_v5 = vmul.f32 -1.442695, %v153_v4 }
  0xe7   :  { %299 = vpow2.f32 %v288_v5 }
  0xed   :  { %v300_v6 = vpop.eup %299 }
  0xee   :  { %v157_v7 = vadd.f32 1.0, %v300_v6 }
  0xf0   :  { %301 = vrcp.f32 %v157_v7  ;;  %v169_v11 = vand.u32 2147483648, %v157_v7  ;;  %v167_v13 = vand.u32 2147483647, %v157_v7  ;;  %vm163_vm4 = vweird.f32 %v157_v7 }
  0xf2   :  { %v170_v15 = vor.u32 1.1754944e-38, %v169_v11  ;;  %vm168_vm6 = vcmp.eq.f32.partialorder %v167_v13, 8.507059e+37 }
  0xf6   :  { %v302_v8 = vpop.eup %301 }
  0xf7   :  { %v159_v9 = vmul.f32 %v302_v8, %v157_v7  ;;  %vm164_vm3 = vweird.f32 %v302_v8 }
  0xf8   :  { %vm165_vm5 = vmor %vm163_vm4, %vm164_vm3 }
  0xf9   :  { %v160_v10 = vsub.f32 1.0, %v159_v9 }
  0xfb   :  { %v161_v12 = vmul.f32 %v302_v8, %v160_v10 }
  0xfd   :  { %v162_v14 = vadd.f32 %v302_v8, %v161_v12 }
  0xff   :  { %v166_v18 = vsel %vm165_vm5, %v302_v8, %v162_v14 }
 0x100   :  { %v171_v17 = vsel %vm168_vm6, %v170_v15, %v166_v18 }
 0x101   :  { %205 = vmatmul.f32.vlgmr.msra.gmra.mxu1 %v171_v17 }
 0x17e   :  { %v206_v19 = vpop.f32.mrf.mxu1 }
 0x17f   :  { %v209_v20 = vrot.slane %v206_v19, 4  ;;  %v216_v21 = vmul.f32 %v206_v19, %v206_v19 }
 0x181   :  { %v210_v22 = vadd.f32 %v209_v20, %v206_v19  ;;  %v217_v23 = vrot.slane %v216_v21, 4 }
 0x183   :  { %v211_v24 = vrot.slane %v210_v22, 2  ;;  %v218_v25 = vadd.f32 %v217_v23, %v216_v21 }
 0x185   :  { %v212_v26 = vadd.f32 %v211_v24, %v210_v22  ;;  %v219_v27 = vrot.slane %v218_v25, 2 }
 0x187   :  { %v213_v28 = vrot.slane %v212_v26, 1  ;;  %v220_v29 = vadd.f32 %v219_v27, %v218_v25 }
 0x189   :  { %v214_v30 = vadd.f32 %v213_v28, %v212_v26  ;;  %v221_v31 = vrot.slane %v220_v29, 1 }
 0x18b   :  { %v215_v32 = vmul.f32 0.125, %v214_v30  ;;  %v222_v33 = vadd.f32 %v221_v31, %v220_v29 }
 0x18d   :  { %v223_v34 = vmul.f32 0.125, %v222_v33  ;;  %v224_v35 = vmul.f32 %v215_v32, %v215_v32 }
 0x18f   :  { %v225_v36 = vsub.f32 %v223_v34, %v224_v35 }
 0x191   :  { %v226_v37 = vmax.f32 %v225_v36, 0.0 }
 0x193   :  { %v227_v38 = vadd.f32 1e-05, %v226_v37 }
 0x195   :  { %303 = vrsqrt.f32 %v227_v38  ;;  %vm234_vm8 = vweird.f32 %v227_v38 }
 0x19b   :  { %v304_v39 = vpop.eup %303 }
 0x19c   :  { %v229_v40 = vmul.f32 %v304_v39, %v227_v38  ;;  %vm235_vm7 = vweird.f32 %v304_v39 }
 0x19d   :  { %vm236_vm9 = vmor %vm234_vm8, %vm235_vm7 }
 0x19e   :  { %v230_v41 = vmul.f32 %v304_v39, %v229_v40 }
 0x1a0   :  { %v231_v42 = vmul.f32 0.5, %v230_v41 }
 0x1a2   :  { %v232_v43 = vsub.f32 1.5, %v231_v42 }
 0x1a4   :  { %v233_v44 = vmul.f32 %v304_v39, %v232_v43 }
 0x1a6   :  { %v237_v45 = vsel %vm236_vm9, %v304_v39, %v233_v44 }
 0x1a7   :  { %v238_v46 = vmul.f32 %v237_v45, %v490_v54 }
 0x1a9   :  { %v239_v47 = vmul.f32 %v238_v46, %v215_v32  ;;  %v244_v49 = vperm.slane %v238_v46, 2 }
 0x1ab   :  { %v241_v48 = vrot.slane %v239_v47, 7  ;;  %v245_v51 = vmul.f32 %v244_v49, %v206_v19 }
 0x1ad   :  { %v243_v50 = vsub.f32 %v490_v54, %v241_v48 }
 0x1af   :  { %v246_v52 = vperm.slane %v243_v50, 3 }
 0x1b1   :  { %v247_v53 = vadd.f32 %v246_v52, %v245_v51 }
 0x1b3   :  { %v248_v55 = vadd.f32 %v247_v53, %v481_v16 }
 0x1b5   :  { %v289_v56 = vmul.f32 -1.442695, %v248_v55 }
 0x1b7   :  { %305 = vpow2.f32 %v289_v56 }
 0x1bd   :  { %v306_v57 = vpop.eup %305 }
 0x1be   :  { %v252_v58 = vadd.f32 1.0, %v306_v57 }
 0x1c0   :  { %307 = vrcp.f32 %v252_v58  ;;  %v264_v62 = vand.u32 2147483648, %v252_v58  ;;  %v262_v0 = vand.u32 2147483647, %v252_v58  ;;  %vm258_vm11 = vweird.f32 %v252_v58 }
 0x1c2   :  { %v265_v16 = vor.u32 1.1754944e-38, %v264_v62  ;;  %vm263_vm13 = vcmp.eq.f32.partialorder %v262_v0, 8.507059e+37 }
 0x1c6   :  { %v308_v59 = vpop.eup %307 }
 0x1c7   :  { %v254_v60 = vmul.f32 %v308_v59, %v252_v58  ;;  %vm259_vm10 = vweird.f32 %v308_v59 }
 0x1c8   :  { %vm260_vm12 = vmor %vm258_vm11, %vm259_vm10 }
 0x1c9   :  { %v255_v61 = vsub.f32 1.0, %v254_v60 }
 0x1cb   :  { %v256_v63 = vmul.f32 %v308_v59, %v255_v61 }
 0x1cd   :  { %v257_v54 = vadd.f32 %v308_v59, %v256_v63 }
 0x1cf   :  { %v261_v1 = vsel %vm260_vm12, %v308_v59, %v257_v54 }
 0x1d0   :  { %v266_v2 = vsel %vm263_vm13, %v265_v16, %v261_v1 }
 0x1d1   :  { %268 = vst [vmem:[#allocation10] sm:$0xff] %v266_v2 }
 0x1d2   :  { %279 = dma.vmem_to_hbm [thread:$0]  %s275_s3, 128, %s277_s11, [#allocation4]  }
 0x1d3   :  { %435 = dma.done.wait [#allocation4], 128  }
 0x1d4   :  { %436 = vsyncadd [#allocation4], 4294967168 }
 0x1d5   :  { %284 = vsyncpa [#allocation3], 1 }
 0x1d6   :  { %285 = vsyncpa [#allocation6], 1 }
 0x1d7   :  { %286 = vsyncpa [#allocation9], 1 }
 0x1d8   :  { %287 = vsyncpa [#allocation4], 1 }

</bundles_post_ra>
